<compile_context>
chip_gen: v5e
topology: v5e:2x2
jax: 0.10.0
libtpu: 0.0.40
codegen_flags: <defaults>
</compile_context>

<pallas_src>
import jax
import jax.numpy as jnp
from jax.experimental import pallas as pl
from jax.experimental.pallas import tpu as pltpu


def _ceil_div(a, b):
    return -(-a // b)


def _round_up(a, b):
    return _ceil_div(a, b) * b


def _dwca_kernel(x_ref, w_ref, b_ref, o_ref):
    # x_ref: (1, C, T) VMEM (input dtype)   w_ref: (C, 1) VMEM f32 (resident)
    # b_ref: (1,) SMEM f32                  o_ref: (1, C, T) VMEM (input dtype)
    x = x_ref[0]                                  # (C, T) input dtype
    xf = x.astype(jnp.float32)                    # widen in-register
    w = w_ref[...]                                # (C, 1) f32
    s = jnp.sum(xf * w, axis=0, keepdims=True) + b_ref[0]   # (1, T) f32
    q = jax.nn.sigmoid(s)                                    # (1, T) f32
    o_ref[0] = (xf * q).astype(o_ref.dtype)       # broadcast over channels


def _vmem_config():
    """Generation-aware (vmem_limit_bytes, tile budget for double-buffered in+out)."""
    try:
        cap = int(pltpu.get_tpu_info().vmem_capacity_bytes)
    except Exception:
        cap = 64 * 1024 * 1024                    # conservative (v7x-sized)
    if cap >= 128 * 1024 * 1024:                  # v5e / v6e
        vmem_limit = 96 * 1024 * 1024
    else:                                          # v7x (64 MiB per TC)
        vmem_limit = 44 * 1024 * 1024
    # Leave headroom for resident weight block + pipeline bookkeeping.
    tile_budget = vmem_limit - 12 * 1024 * 1024
    return vmem_limit, tile_budget


def _pick_tile(HW, N, C, c_pad, itemsize, tile_budget_bytes,
               payload_target_bytes=8 * 1024 * 1024,
               min_grid_steps=4):
    """Lane tile: multiple of 128, sized by bytes-per-step, VMEM-safe, TC-feeding."""
    hw_cap = _round_up(HW, 128)                            # never wider than needed
    # Target from (in + out) payload per grid step.
    t_payload = payload_target_bytes // max(2 * itemsize * C, 1)
    # Cap from VMEM: double-buffered in + out blocks, sublane-padded C.
    t_vmem = tile_budget_bytes // max(4 * itemsize * c_pad, 1)
    tile = max(128, (min(t_payload, t_vmem) // 128) * 128)
    tile = min(tile, hw_cap)
    # Keep the grid long enough for both v7x TensorCores / pipeline overlap.
    while tile > 128 and N * _ceil_div(HW, tile) < min_grid_steps:
        tile = max(128, ((tile // 2) // 128) * 128)
    return tile


def deepwise_channel_attention(x_nchw, weight, bias):
    """x_nchw: (N, C, H, W); weight: (C,) f32 (1x1-conv kernel squeezed); bias: () f32."""
    N, C, H, W = x_nchw.shape
    HW = H * W
    dtype = x_nchw.dtype
    itemsize = jnp.dtype(dtype).itemsize

    # Sublane packing for the input dtype (f32 -> 8, bf16 -> 16, int8/fp8 -> 32).
    sublane = max(8, 32 // max(itemsize, 1))
    c_pad = max(sublane, _round_up(C, sublane))

    vmem_limit, tile_budget = _vmem_config()
    tile_hw = _pick_tile(HW, N, C, c_pad, itemsize, tile_budget)
    num_tiles = _ceil_div(HW, tile_hw)            # ragged last block is fine (masked stores)

    # Zero-copy reshape; input dtype preserved (no HBM-doubling upcast).
    x_flat = x_nchw.reshape(N, C, HW)
    w2d = weight.reshape(C, 1).astype(jnp.float32)
    b1d = bias.reshape(1).astype(jnp.float32)

    out_flat = pl.pallas_call(
        _dwca_kernel,
        out_shape=jax.ShapeDtypeStruct((N, C, HW), dtype),
        grid_spec=pltpu.PrefetchScalarGridSpec(
            num_scalar_prefetch=0,
            grid=(N, num_tiles),
            in_specs=[
                pl.BlockSpec((1, C, tile_hw), lambda n, t: (n, 0, t)),
                pl.BlockSpec((C, 1), lambda n, t: (0, 0)),          # resident weight
                pl.BlockSpec(memory_space=pltpu.MemorySpace.SMEM),  # scalar bias
            ],
            out_specs=pl.BlockSpec((1, C, tile_hw), lambda n, t: (n, 0, t)),
        ),
        compiler_params=pltpu.CompilerParams(
            dimension_semantics=("parallel", "parallel"),
            vmem_limit_bytes=vmem_limit,
        ),
    )(x_flat, w2d, b1d)

    return out_flat.reshape(N, C, H, W)


def _reference(x_nchw, weight, bias):
    # Pure-JAX reference matching the PyTorch forward.
    q = jax.nn.sigmoid(
        jnp.einsum("nchw,c->nhw", x_nchw.astype(jnp.float32), weight)[:, None, :, :] + bias)
    return (x_nchw.astype(jnp.float32) * q).astype(x_nchw.dtype)


if __name__ == "__main__":
    key = jax.random.PRNGKey(0)
    k_x, k_w, k_b = jax.random.split(key, 3)

    N, C, H, W = 2, 4, 16, 16
    x = jax.random.normal(k_x, (N, C, H, W), dtype=jnp.float32)

    # Deterministic Conv2d(C, 1, 1) parameter init (PyTorch-style uniform bound).
    fan_in = C  # 1x1 kernel
    bound = 1.0 / (fan_in ** 0.5)
    weight = jax.random.uniform(k_w, (C,), jnp.float32, -bound, bound)
    bias = jax.random.uniform(k_b, (), jnp.float32, -bound, bound)

    out = deepwise_channel_attention(x, weight, bias)
    out = jax.block_until_ready(out)

    ref = _reference(x, weight, bias)
    assert out.shape == (N, C, H, W)
    assert out.dtype == x.dtype
    assert jnp.allclose(out, ref, atol=1e-5, rtol=1e-5), "mismatch vs reference"

    print("KERNEL_OK")
</pallas_src>

<mosaic_0001>
module attributes {stable_mosaic.version = 11 : i64} {
  func.func @_dwca_kernel(%arg0: i32, %arg1: i32, %arg2: memref<1x4x128xf32, #tpu.memory_space<vmem>>, %arg3: memref<4x1xf32, #tpu.memory_space<vmem>>, %arg4: memref<1xf32, #tpu.memory_space<smem>>, %arg5: memref<1x4x128xf32, #tpu.memory_space<vmem>>) attributes {dimension_semantics = [#tpu.dimension_semantics<parallel>, #tpu.dimension_semantics<parallel>], iteration_bounds = array<i64: 2, 2>, scalar_prefetch = 0 : i64, scratch_operands = 0 : i64, tpu.core_type = #tpu.core_type<tc>, window_params = [{transform_indices = @transform_0, window_bounds = array<i64: 1, 4, 128>}, {pipeline_mode = #tpu.pipeline_mode<synchronous>, transform_indices = @transform_1, window_bounds = array<i64: 4, 1>}, {transform_indices = @transform_2, window_bounds = array<i64: 1>}, {transform_indices = @transform_3, window_bounds = array<i64: 1, 4, 128>}]} {
    %c0 = arith.constant 0 : index
    %c0_0 = arith.constant 0 : index
    %c0_1 = arith.constant 0 : index
    %0 = vector.load %arg2[%c0, %c0_0, %c0_1] : memref<1x4x128xf32, #tpu.memory_space<vmem>>, vector<1x4x128xf32>
    %1 = vector.shape_cast %0 : vector<1x4x128xf32> to vector<4x128xf32>
    %c0_2 = arith.constant 0 : index
    %c0_3 = arith.constant 0 : index
    %2 = vector.load %arg3[%c0_2, %c0_3] : memref<4x1xf32, #tpu.memory_space<vmem>>, vector<4x1xf32>
    %3 = vector.broadcast %2 : vector<4x1xf32> to vector<4x128xf32>
    %4 = arith.mulf %1, %3 : vector<4x128xf32>
    %cst = arith.constant dense<0.000000e+00> : vector<128xf32>
    %5 = vector.multi_reduction <add>, %4, %cst [0] : vector<4x128xf32> to vector<128xf32>
    %6 = vector.shape_cast %5 : vector<128xf32> to vector<1x128xf32>
    %c0_4 = arith.constant 0 : index
    %7 = memref.load %arg4[%c0_4] : memref<1xf32, #tpu.memory_space<smem>>
    %8 = vector.broadcast %7 : f32 to vector<1x128xf32>
    %9 = arith.addf %6, %8 : vector<1x128xf32>
    %10 = arith.negf %9 : vector<1x128xf32>
    %11 = math.exp %10 : vector<1x128xf32>
    %cst_5 = arith.constant 1.000000e+00 : f32
    %12 = vector.broadcast %cst_5 : f32 to vector<1x128xf32>
    %13 = arith.addf %12, %11 : vector<1x128xf32>
    %14 = arith.divf %12, %13 : vector<1x128xf32>
    %15 = vector.broadcast %14 : vector<1x128xf32> to vector<4x128xf32>
    %16 = arith.mulf %1, %15 : vector<4x128xf32>
    %c0_6 = arith.constant 0 : index
    %c0_7 = arith.constant 0 : index
    %c0_8 = arith.constant 0 : index
    %17 = vector.load %arg5[%c0_6, %c0_7, %c0_8] : memref<1x4x128xf32, #tpu.memory_space<vmem>>, vector<1x4x128xf32>
    %18 = vector.shape_cast %17 : vector<1x4x128xf32> to vector<4x128xf32>
    %19 = vector.shape_cast %16 : vector<4x128xf32> to vector<1x4x128xf32>
    tpu.vector_store %arg5[%c0_6, %c0_7, %c0_8], %19 {strides = array<i32>} : memref<1x4x128xf32, #tpu.memory_space<vmem>>, vector<1x4x128xf32>,
    return
  }
  func.func @transform_0(%arg0: i32, %arg1: i32) -> (i32, i32, i32) {
    %c0_i32 = arith.constant 0 : i32
    %c0_i32_0 = arith.constant 0 : i32
    return %arg0, %c0_i32, %arg1 : i32, i32, i32
  }
  func.func @transform_1(%arg0: i32, %arg1: i32) -> (i32, i32) {
    %c0_i32 = arith.constant 0 : i32
    %c0_i32_0 = arith.constant 0 : i32
    %c0_i32_1 = arith.constant 0 : i32
    return %c0_i32, %c0_i32_0 : i32, i32
  }
  func.func @transform_2(%arg0: i32, %arg1: i32) -> i32 {
    %c0_i32 = arith.constant 0 : i32
    %c0_i32_0 = arith.constant 0 : i32
    return %c0_i32 : i32
  }
  func.func @transform_3(%arg0: i32, %arg1: i32) -> (i32, i32, i32) {
    %c0_i32 = arith.constant 0 : i32
    %c0_i32_0 = arith.constant 0 : i32
    return %arg0, %c0_i32, %arg1 : i32, i32, i32
  }
}

</mosaic_0001>

<bundles_post_ra>
// kernel: tpu_custom_call.1
= control target key start
LH: loop header
LB: loop body
LE: loop exit
PB: predicated region body
PF: predicated region fallthrough
CT: control target
= control target key end

     0   :  { %s753_s0 = inlined_call_operand.hbm [shape: f32[2,4,256], index: 0, kind: input, shape index: {}]   ;;  %s754_s1 = inlined_call_operand.vmem [shape: f32[4,1], index: 1, kind: input, shape index: {}]   ;;  %s755_s2 = inlined_call_operand.<no memory space> [shape: f32[1], index: 2, kind: input, shape index: {}]   ;;  %s756_s3 = inlined_call_operand.hbm [shape: f32[2,4,256], index: 3, kind: output, shape index: {}]  }
   0x1   :  { %8 = sst [smem:[#allocation2]] %s755_s2 }
   0x2   :  { %9 = vsyncpa [#allocation4], 0 }
   0x3   :  { %11 = vsyncpa [#allocation4 + $0x1], 0 }
   0x4   :  { %12 = vsyncpa [#allocation5], 0 }
   0x5   :  { %14 = vsyncpa [#allocation5 + $0x1], 0  ;;  %s604_s14 = smov 0   ;;  %s606_s15 = smov 0  }
   0x6   :  { %s608_s16 = smov 0   ;;  %s610_s17 = smov 0  }
   0x7   :  { %s612_s18 = smov 0   ;;  %s614_s19 = smov 0  }
   0x8   :  { %s616_s20 = smov 0   ;;  %s618_s21 = smov 0  }
   0x9 LB: > { %s350_s2 = sadd.s32 4294967295, %s578_s21   ;;  %s351_s22 = sadd.s32 4294967294, %s578_s21   ;;  %s578_s21 = sphi %s618_s21, %s20_s21   ;;  %s574_s20 = sphi %s616_s20, %s767_s20   ;;  %s570_s19 = sphi %s614_s19, %s766_s19   ;;  %s566_s18 = sphi %s612_s18, %s765_s18   ;;  %s562_s17 = sphi %s610_s17, %s764_s17   ;;  %s558_s16 = sphi %s608_s16, %s763_s16   ;;  %s554_s15 = sphi %s606_s15, %s762_s15   ;;  %s550_s14 = sphi %s604_s14, %s761_s14  }
   0xa   : > { %s29_s23 = sadd.s32 1, %s570_s19  ;;  %s32_s24 = sadd.s32 1, %s574_s20 }
   0xb   : > { %p30_p0 = scmp.ge.s32.totalorder %s29_s23, 2  ;;  %s41_s25 = sadd.s32 1, %s558_s16 }
   0xc   : > { %p48_p1 = scmp.ne.s32.totalorder %s558_s16, %s554_s15  ;;  %p49_p2 = scmp.eq.s32.totalorder %s578_s21, 0 }
   0xd   : > { %s769_s23 = smov (%p30_p0, %s29_s23), 0  ;;  %s771_s24 = smov (!%p30_p0, %s32_s24), %s574_s20 }
   0xe   : > { %s37_s26 = ssub.s32 %s570_s19, %s769_s23  ;;  %p657_p3 = por %p49_p2, %p48_p1 }
   0xf   : > { %p34_p4 = scmp.ge.s32.totalorder %s771_s24, 2  ;;  %p54_p5 = scmp.ne.s32.totalorder %s554_s15, %s550_s14 }
  0x10   : > { %p55_p6 = scmp.eq.s32.totalorder %s350_s2, 0  ;;  %p122_p7 = scmp.eq.s32.totalorder %s350_s2, 3 }
  0x11   : > { %s773_s24 = smov (%p34_p4, %s771_s24), 0  ;;  %p128_p10 = scmp.eq.s32.totalorder %s351_s22, 3 }
  0x12   : > { %p665_p8 = por %p55_p6, %p54_p5  ;;  %p669_p9 = por %p122_p7, %p48_p1 }
  0x13   : > { %s36_s30 = ssub.s32 %s574_s20, %s773_s24  ;;  %p675_p12 = por %p128_p10, %p54_p5 }
  0x14   : > { %s38_s4 = sor.u32 %s37_s26, %s36_s30  ;;  %p378_p13 = scmp.lt.s32.totalorder %s578_s21, 4 }
  0x15   : > { %p39_p11 = scmp.eq.s32.totalorder %s38_s4, 0  ;;  %s154_s6 = sand.u32 1, %s558_s16  }
  0x16   : > { %s354_s8 = sshll.u32 %s154_s6, 2  ;;  %s355_s9 = sshll.u32 %s574_s20, 1 }
  0x17   : > { %s682_s7 = scalar_select %p39_p11, %s558_s16, %s41_s25  }
  0x18   : > { %s162_s10 = sadd.s32 %s570_s19, %s355_s9  ;;  %s158_s11 = scalar_lea.vmem [#allocation3], %s354_s8 }
  0x19   : > { %s168_s12 = sshll.u32 %s158_s11, 4  ;;  %s356_s13 = sshll.u32 %s162_s10, 2  ;;  %s169_s12 = int_to_ptr.vmem [resolvable:$true] %s168_s12 }
  0x1a   : > { %s164_s26 = scalar_lea.hbm %s753_s0, %s356_s13  ;;  %p371_p0 = pnand %p378_p13, %p657_p3 }
  0x1b   : > { %s166_s30 = sshll.u32 %s164_s26, 4  ;;  %p357_p1 = scmp.ge.s32.totalorder %s578_s21, 1  ;;  %s167_s30 = int_to_ptr.hbm [resolvable:$true] %s166_s30 }
  0x1c   : > { %s155_s4 = scalar_lea.sflag [#allocation4], %s154_s6  ;;  %p173_p2 = scmp.lt.s32.totalorder %s578_s21, 5 }
  0x1d   : > { %373 = dma.hbm_to_vmem [thread:$0]  (!%p371_p0), %s167_s30, 64, %s169_s12, %s155_s4  }
  0x1e   : > { %p174_p4 = pnand %p357_p1, %p173_p2 }
  0x1f   : > { %s694_s25 = sand.u32 (!%p174_p4), 1, %s554_s15  }
  0x20   : > { %177 = sbr.rel (%p174_p4) target bundleno = 205 (0xcd), region = 32  ;;  %s358_s8 = sshll.u32 (!%p174_p4), %s694_s25, 2 }
  0x21   : > { %s180_s9 = scalar_lea.sflag (!%p174_p4), [#allocation4], %s694_s25  ;;  %s183_s27 = scalar_lea.vmem (!%p174_p4), [#allocation3], %s358_s8 }
  0x25   : > { %541 = dma.done.wait (%p665_p8), %s180_s9, 64  }
  0x26   : > { %543 = vsyncadd (%p665_p8), %s180_s9, 4294967232  ;;  %v580_v0 = vmov 0   ;;  %v208_v1 = vld [vmem:[%s754_s1] sm:$0xf]  ;;  %vm215_vm0 = vcmask 1043456   ;;  %s223_s11 = sld [smem:[#allocation2]] }
  0x27   : > { %445 = vset.pattern.permute.xlu0 %v580_v0  ;;  %v207_v2 = vld [vmem:[%s183_s27] sm:$0xf]  ;;  %s362_s28 = sshll.u32 %s566_s18, 1  ;;  %s248_s4 = scalar_lea.sflag [#allocation5], %s694_s25 }
  0x28   : > { %211 = vperm.xlu0 %445, %v208_v1   ;;  %s258_s12 = sadd.s32 %s562_s17, %s362_s28  ;;  %s206_s17 = scalar_lea.vmem [#allocation6], %s358_s8 }
  0x29   : > { %s363_s13 = sshll.u32 %s258_s12, 2  ;;  %s262_s18 = sshll.u32 %s206_s17, 4  ;;  %s263_s18 = int_to_ptr.vmem [resolvable:$true] %s262_s18 }
  0x2a   : > { %s260_s26 = scalar_lea.hbm %s756_s3, %s363_s13  ;;  %s500_s8 = scalar_lea.hbm %s756_s3, 16 }
  0x2b   : > { %s264_s30 = sshll.u32 %s260_s26, 4  ;;  %s265_s30 = int_to_ptr.hbm [resolvable:$true] %s264_s30 }
  0x2c   : > { %v224_v11 = vstv %s223_s11  ;;  %s494_s9 = sshra.s32 %s265_s30, 4  ;;  %s495_s9 = int_to_ptr.hbm [resolvable:$true] %s494_s9 }
  0x2d   : > { %s496_s27 = scalar_lea.hbm %s495_s9, 4  ;;  %p501_p7 = scmp.lt.s32.totalorder %s495_s9, %s756_s3 }
  0x2e   : > { %p497_p3 = scmp.ne.s32.totalorder %s495_s9, %s496_s27  ;;  %p502_p8 = scmp.lt.s32.totalorder %s500_s8, %s496_s27 }
  0x30   : > { %p498_p5 = pnand %p497_p3, %p669_p9  ;;  %p503_p10 = por %p502_p8, %p501_p7 }
  0x32   : > { %p499_p6 = pneg %p498_p5 }
  0x34   : > { %p504_p11 = pnand %p503_p10, %p499_p6 }
  0x9a   : > { %v212_v3 = vpop.permute.xlu0 %211 }
  0x9b   : > { %v214_v4 = vmul.f32 %v212_v3, %v207_v2 }
  0x9d   : > { %v216_v5 = vsel %vm215_vm0, %v214_v4, 0.0 }
  0x9e   : > { %v217_v6 = vrot.slane %v216_v5, 4 }
  0xa0   : > { %v218_v7 = vadd.f32 %v217_v6, %v216_v5 }
  0xa2   : > { %v219_v8 = vrot.slane %v218_v7, 2 }
  0xa4   : > { %v220_v9 = vadd.f32 %v219_v8, %v218_v7 }
  0xa6   : > { %v221_v10 = vrot.slane %v220_v9, 1 }
  0xa8   : > { %v222_v12 = vadd.f32 %v221_v10, %v220_v9 }
  0xaa   : > { %v225_v13 = vadd.f32 %v224_v11, %v222_v12 }
  0xac   : > { %v360_v14 = vmul.f32 -1.442695, %v225_v13 }
  0xae   : > { %446 = vpow2.f32 %v360_v14 }
  0xb4   : > { %v447_v15 = vpop.eup %446 }
  0xb5   : > { %v229_v16 = vadd.f32 1.0, %v447_v15 }
  0xb7   : > { %448 = vrcp.f32 %v229_v16  ;;  %v241_v20 = vand.u32 2147483648, %v229_v16  ;;  %v239_v22 = vand.u32 2147483647, %v229_v16  ;;  %vm235_vm2 = vweird.f32 %v229_v16 }
  0xb9   : > { %v242_v24 = vor.u32 1.1754944e-38, %v241_v20  ;;  %vm240_vm4 = vcmp.eq.f32.partialorder %v239_v22, 8.507059e+37 }
  0xbd   : > { %v449_v17 = vpop.eup %448 }
  0xbe   : > { %v231_v18 = vmul.f32 %v449_v17, %v229_v16  ;;  %vm236_vm1 = vweird.f32 %v449_v17 }
  0xbf   : > { %vm237_vm3 = vmor %vm235_vm2, %vm236_vm1 }
  0xc0   : > { %v232_v19 = vsub.f32 1.0, %v231_v18 }
  0xc2   : > { %v233_v21 = vmul.f32 %v449_v17, %v232_v19 }
  0xc4   : > { %v234_v23 = vadd.f32 %v449_v17, %v233_v21 }
  0xc6   : > { %v238_v25 = vsel %vm237_vm3, %v449_v17, %v234_v23 }
  0xc7   : > { %v243_v26 = vsel %vm240_vm4, %v242_v24, %v238_v25 }
  0xc8   : > { %v245_v27 = vmul.f32 %v243_v26, %v207_v2 }
  0xca   : > { %246 = vst [vmem:[%s206_s17] sm:$0xf] %v245_v27 }
  0xcb   : > { %507 = shalt.err (!%p504_p11)
}
  0xcc   : > { %368 = dma.vmem_to_hbm [thread:$0]  (%p669_p9), %s263_s18, 64, %s265_s30, %s248_s4  }
  0xcd PF: > { %p379_p13 = scmp.ge.s32.totalorder %s578_s21, 2  ;;  %s276_s25 = sand.u32 1, %s550_s14  }
  0xce   : > { %s277_s12 = scalar_lea.sflag [#allocation5], %s276_s25 }
  0xcf   : > { %p375_p0 = pnand %p379_p13, %p675_p12 }
  0xd1   : > { %p376_p1 = pneg %p375_p0 }
  0xd3   : > { %545 = dma.done.wait (%p376_p1), %s277_s12, 64  }
  0xd4   : > { %547 = vsyncadd (%p376_p1), %s277_s12, 4294967232  ;;  %s20_s21 = sadd.s32 1, %s578_s21   ;;  %s761_s14 = smov %s554_s15 }
  0xd5   : > { %p17_p2 = scmp.ge.s32.totalorder %s20_s21, 6   ;;  %s762_s15 = smov %s558_s16 }
  0xd6   : > { %s763_s16 = smov %s682_s7  ;;  %s764_s17 = smov %s570_s19 }
  0xd7   : > { %s765_s18 = smov %s574_s20  ;;  %s766_s19 = smov %s769_s23 }
  0xd8   : > { %s767_s20 = smov %s773_s24  ;;  %19 = sbr.rel (!%p17_p2) target bundleno = 9 (0x9), region = 77 }
  0xdd   :  { %283 = vsyncpa [#allocation4], 1 }
  0xde   :  { %285 = vsyncpa [#allocation4 + $0x1], 1 }
  0xdf   :  { %286 = vsyncpa [#allocation5], 1 }
  0xe0   :  { %288 = vsyncpa [#allocation5 + $0x1], 1 }

</bundles_post_ra>
